<compile_context>
chip_gen: v5e
topology: v5e:2x2
jax: 0.10.0
libtpu: 0.0.40
codegen_flags: <defaults>
</compile_context>

<pallas_src>
import functools

import jax
import jax.numpy as jnp
from jax.experimental import pallas as pl
from jax.experimental.pallas import tpu as pltpu


def _round_up(n, m):
    return ((n + m - 1) // m) * m


def _cdiv(a, b):
    return -(-a // b)


def _vmem_capacity_bytes():
    """Physical VMEM of the current generation (trace-time query, with fallback)."""
    try:
        info = pltpu.get_tpu_info()
        for attr in ("vmem_capacity_bytes", "vmem_size_bytes"):
            cap = getattr(info, attr, None)
            if cap:
                return int(cap)
    except Exception:
        pass
    # Conservative fallback = v7x per-core VMEM (64 MiB); safe everywhere.
    return 64 * 1024 * 1024


def _vmem_limit_bytes():
    # Request half of physical VMEM (headroom for compiler scratch / params),
    # never more than 64 MiB.  v5e/v6e -> 64 MiB, v7x -> 32 MiB.
    return int(min(_vmem_capacity_bytes() // 2, 64 * 1024 * 1024))


def _pick_tile_rows(rows, width, in_dtype, out_dtype, vmem_limit, min_grid_steps=4):
    """Largest row tile whose honest VMEM footprint fits the scoped limit."""
    in_b = jnp.dtype(in_dtype).itemsize
    out_b = jnp.dtype(out_dtype).itemsize
    # Per-row footprint: 2x double-buffered input + 2x output at I/O dtype,
    # plus ~4 full-width f32 temps that Mosaic materializes in VMEM.
    per_row = width * (2 * in_b + 2 * out_b + 4 * 4)
    budget = int(vmem_limit * 0.75)          # 25% headroom for params/internals
    max_by_vmem = max(1, budget // per_row)
    # Sublane packing multiple (16 for sub-32-bit dtypes, 8 for 32-bit).
    sub = 16 if min(in_b, out_b) < 4 else 8
    # Keep >= min_grid_steps grid steps so v7x's 2 TCs both get work and the
    # pipeline has something to overlap, even when VMEM would allow one tile.
    by_steps = _round_up(_cdiv(rows, min_grid_steps), sub)
    tile = min(max_by_vmem, by_steps)
    tile = max(sub, (tile // sub) * sub)
    return tile


def _layernorm_rowwise_kernel(x_ref, scale_ref, bias_ref, o_ref, *, eps, depth):
    """Fallback path: normalize over the (lane-sparse if depth<128) last axis."""
    x = x_ref[...].astype(jnp.float32)                       # (tile, depth)
    mean = jnp.mean(x, axis=-1, keepdims=True)
    diff = x - mean
    inv_dof = jnp.float32(1.0 / max(depth - 1, 1))           # torch.std ddof=1
    var = jnp.sum(diff * diff, axis=-1, keepdims=True) * inv_dof
    inv = pl.reciprocal(jnp.sqrt(var) + jnp.float32(eps), approx=False)  # (tile,1)
    o_ref[...] = ((diff * inv) * scale_ref[...] + bias_ref[...]).astype(o_ref.dtype)


def _layernorm_packed_kernel(x_ref, scale_ref, bias_ref, seg_ref, o_ref, *, eps, depth):
    """Lane-dense path: g = 128//depth rows packed per 128-lane row.

    seg_ref is a resident (width, width) block-diagonal-ones matrix; x @ seg
    broadcasts each depth-wide segment's sum across that segment (MXU), so all
    VPU work and the output store stay lane-dense (unmasked vst).
    """
    x = x_ref[...].astype(jnp.float32)                       # (tile, g*depth)
    seg = seg_ref[...]                                       # (g*depth, g*depth)
    inv_d = jnp.float32(1.0 / depth)
    inv_dof = jnp.float32(1.0 / max(depth - 1, 1))           # torch.std ddof=1
    mean = jnp.dot(x, seg, preferred_element_type=jnp.float32) * inv_d
    diff = x - mean
    var = jnp.dot(diff * diff, seg, preferred_element_type=jnp.float32) * inv_dof
    inv = pl.reciprocal(jnp.sqrt(var) + jnp.float32(eps), approx=False)
    o_ref[...] = ((diff * inv) * scale_ref[...] + bias_ref[...]).astype(o_ref.dtype)


def layer_norm(x, scale, bias, *, eps=1e-6, tile_rows=None):
    """x: (..., depth); scale, bias: (depth,).  Normalizes over the last axis."""
    depth = x.shape[-1]
    orig_shape = x.shape
    x2 = x.reshape(-1, depth)
    rows = x2.shape[0]
    out_dtype = x.dtype
    in_b = jnp.dtype(x2.dtype).itemsize
    out_b = jnp.dtype(out_dtype).itemsize

    # Lane-density packing (biggest documented single lever): pack g rows per
    # 128-lane row when depth divides 128.  Wrapper reshapes are free
    # (row-major reflatten); no host-side padding copies.
    g = 128 // depth if (depth < 128 and 128 % depth == 0) else 1
    packed = (g > 1) and (rows % g == 0) and (rows >= g)

    if packed:
        width = g * depth
        prows = rows // g
        xw = x2.reshape(prows, width)
        scale_w = jnp.tile(scale.astype(jnp.float32), g).reshape(1, width)
        bias_w = jnp.tile(bias.astype(jnp.float32), g).reshape(1, width)
        seg_id = jnp.arange(width, dtype=jnp.int32) // depth
        seg_mat = (seg_id[:, None] == seg_id[None, :]).astype(jnp.float32)
    else:
        width = depth
        prows = rows
        xw = x2
        scale_w = scale.astype(jnp.float32).reshape(1, width)
        bias_w = bias.astype(jnp.float32).reshape(1, width)
        seg_mat = None

    vmem_limit = _vmem_limit_bytes()
    if tile_rows is None:
        tile_rows = _pick_tile_rows(prows, width, x2.dtype, out_dtype, vmem_limit)

    grid = (pl.cdiv(prows, tile_rows),)

    # Advisory cost estimate for XLA scheduling around this mem-bound call.
    elem = rows * depth
    flops = 10 * elem + (4 * prows * width * width if packed else 2 * elem)
    transcendentals = 2 * (elem if packed else rows)         # sqrt + reciprocal
    bytes_accessed = elem * (in_b + out_b) + 2 * width * 4 + (
        width * width * 4 if packed else 0)
    cost = pl.CostEstimate(flops=flops, transcendentals=transcendentals,
                           bytes_accessed=bytes_accessed)

    row_spec = pl.BlockSpec((tile_rows, width), lambda i: (i, 0))
    const_spec = pl.BlockSpec((1, width), lambda i: (0, 0))   # resident params

    if packed:
        kernel = functools.partial(_layernorm_packed_kernel, eps=eps, depth=depth)
        in_specs = [row_spec, const_spec, const_spec,
                    pl.BlockSpec((width, width), lambda i: (0, 0))]
        args = (xw, scale_w, bias_w, seg_mat)
    else:
        kernel = functools.partial(_layernorm_rowwise_kernel, eps=eps, depth=depth)
        in_specs = [row_spec, const_spec, const_spec]
        args = (xw, scale_w, bias_w)

    out = pl.pallas_call(
        kernel,
        out_shape=jax.ShapeDtypeStruct((prows, width), out_dtype),
        grid_spec=pltpu.PrefetchScalarGridSpec(
            num_scalar_prefetch=0,
            grid=grid,
            in_specs=in_specs,
            out_specs=pl.BlockSpec((tile_rows, width), lambda i: (i, 0)),
        ),
        compiler_params=pltpu.CompilerParams(
            dimension_semantics=("parallel",),   # shards row grid across v7x's 2 TCs
            vmem_limit_bytes=vmem_limit,         # generation-aware scoped limit
        ),
        cost_estimate=cost,
    )(*args)

    return out.reshape(orig_shape)


def _reference(x, scale, bias, eps):
    depth = x.shape[-1]
    xf = x.astype(jnp.float32)
    mean = jnp.mean(xf, axis=-1, keepdims=True)
    var = jnp.sum((xf - mean) ** 2, axis=-1, keepdims=True) / max(depth - 1, 1)
    std = jnp.sqrt(var)
    y = (xf - mean) / (std + eps) * scale.astype(jnp.float32) + bias.astype(jnp.float32)
    return y.astype(x.dtype)


if __name__ == "__main__":
    key = jax.random.PRNGKey(0)

    # Case 1: depth=32 divides 128 and rows % (128//32) == 0 -> packed,
    # lane-dense path (MXU segment reductions).
    batch, seq, depth = 2, 8, 32
    x = jax.random.normal(key, (batch, seq, depth), dtype=jnp.float32)
    scale = jnp.ones((depth,), dtype=jnp.float32)   # module init: ones
    bias = jnp.ones((depth,), dtype=jnp.float32)    # module init: ones
    y = jax.block_until_ready(layer_norm(x, scale, bias, eps=1e-6))
    ref = _reference(x, scale, bias, 1e-6)
    assert y.shape == x.shape
    assert jnp.allclose(y, ref, atol=1e-5, rtol=1e-5), float(jnp.max(jnp.abs(y - ref)))

    # Case 2: rows (=5) not a multiple of g -> row-wise fallback path,
    # exercises the masked partial last block (no host-side padding).
    x2 = jax.random.normal(jax.random.PRNGKey(1), (1, 5, depth), dtype=jnp.float32)
    y2 = jax.block_until_ready(layer_norm(x2, scale, bias, eps=1e-6))
    ref2 = _reference(x2, scale, bias, 1e-6)
    assert jnp.allclose(y2, ref2, atol=1e-5, rtol=1e-5), float(jnp.max(jnp.abs(y2 - ref2)))

    # Case 3: depth=40 does not divide 128 -> row-wise path with a non-128
    # lane width (functionally supported, lane-sparse; documented above).
    depth3 = 40
    x3 = jax.random.normal(jax.random.PRNGKey(2), (3, 7, depth3), dtype=jnp.float32)
    scale3 = jnp.ones((depth3,), dtype=jnp.float32)
    bias3 = jnp.ones((depth3,), dtype=jnp.float32)
    y3 = jax.block_until_ready(layer_norm(x3, scale3, bias3, eps=1e-6))
    ref3 = _reference(x3, scale3, bias3, 1e-6)
    assert jnp.allclose(y3, ref3, atol=1e-5, rtol=1e-5), float(jnp.max(jnp.abs(y3 - ref3)))

    print("KERNEL_OK")
</pallas_src>

<mosaic_0001>
module attributes {stable_mosaic.version = 11 : i64} {
  func.func @_layernorm_packed_kernel(%arg0: i32, %arg1: memref<8x128xf32, #tpu.memory_space<vmem>>, %arg2: memref<1x128xf32, #tpu.memory_space<vmem>>, %arg3: memref<1x128xf32, #tpu.memory_space<vmem>>, %arg4: memref<128x128xf32, #tpu.memory_space<vmem>>, %arg5: memref<8x128xf32, #tpu.memory_space<vmem>>) attributes {dimension_semantics = [#tpu.dimension_semantics<parallel>], iteration_bounds = array<i64: 1>, scalar_prefetch = 0 : i64, scratch_operands = 0 : i64, tpu.core_type = #tpu.core_type<tc>, window_params = [{transform_indices = @transform_0, window_bounds = array<i64: 8, 128>}, {pipeline_mode = #tpu.pipeline_mode<synchronous>, transform_indices = @transform_1, window_bounds = array<i64: 1, 128>}, {pipeline_mode = #tpu.pipeline_mode<synchronous>, transform_indices = @transform_2, window_bounds = array<i64: 1, 128>}, {pipeline_mode = #tpu.pipeline_mode<synchronous>, transform_indices = @transform_3, window_bounds = array<i64: 128, 128>}, {transform_indices = @transform_4, window_bounds = array<i64: 8, 128>}]} {
    %c0 = arith.constant 0 : index
    %c0_0 = arith.constant 0 : index
    %0 = vector.load %arg1[%c0, %c0_0] : memref<8x128xf32, #tpu.memory_space<vmem>>, vector<8x128xf32>
    %c0_1 = arith.constant 0 : index
    %c0_2 = arith.constant 0 : index
    %1 = vector.load %arg4[%c0_1, %c0_2] : memref<128x128xf32, #tpu.memory_space<vmem>>, vector<128x128xf32>
    %cst = arith.constant dense<0.000000e+00> : vector<8x128xf32>
    %2 = tpu.matmul %0, %1, %cst {dimension_numbers = #tpu.dot_dimension_numbers<[1], [0], [0], [1], [0, 0, 1, 1], [], []>} : vector<8x128xf32>, vector<128x128xf32>, vector<8x128xf32> -> vector<8x128xf32>
    %cst_3 = arith.constant 3.125000e-02 : f32
    %3 = vector.broadcast %cst_3 : f32 to vector<8x128xf32>
    %4 = arith.mulf %2, %3 : vector<8x128xf32>
    %5 = arith.subf %0, %4 : vector<8x128xf32>
    %6 = arith.mulf %5, %5 : vector<8x128xf32>
    %cst_4 = arith.constant dense<0.000000e+00> : vector<8x128xf32>
    %7 = tpu.matmul %6, %1, %cst_4 {dimension_numbers = #tpu.dot_dimension_numbers<[1], [0], [0], [1], [0, 0, 1, 1], [], []>} : vector<8x128xf32>, vector<128x128xf32>, vector<8x128xf32> -> vector<8x128xf32>
    %cst_5 = arith.constant 0.0322580636 : f32
    %8 = vector.broadcast %cst_5 : f32 to vector<8x128xf32>
    %9 = arith.mulf %7, %8 : vector<8x128xf32>
    %10 = math.sqrt %9 : vector<8x128xf32>
    %cst_6 = arith.constant 9.99999997E-7 : f32
    %11 = vector.broadcast %cst_6 : f32 to vector<8x128xf32>
    %12 = arith.addf %10, %11 : vector<8x128xf32>
    %13 = tpu.reciprocal %12 : vector<8x128xf32> -> vector<8x128xf32>
    %14 = arith.mulf %5, %13 : vector<8x128xf32>
    %c0_7 = arith.constant 0 : index
    %c0_8 = arith.constant 0 : index
    %15 = vector.load %arg2[%c0_7, %c0_8] : memref<1x128xf32, #tpu.memory_space<vmem>>, vector<1x128xf32>
    %16 = vector.broadcast %15 : vector<1x128xf32> to vector<8x128xf32>
    %17 = arith.mulf %14, %16 : vector<8x128xf32>
    %c0_9 = arith.constant 0 : index
    %c0_10 = arith.constant 0 : index
    %18 = vector.load %arg3[%c0_9, %c0_10] : memref<1x128xf32, #tpu.memory_space<vmem>>, vector<1x128xf32>
    %19 = vector.broadcast %18 : vector<1x128xf32> to vector<8x128xf32>
    %20 = arith.addf %17, %19 : vector<8x128xf32>
    %c0_11 = arith.constant 0 : index
    %c0_12 = arith.constant 0 : index
    %21 = vector.load %arg5[%c0_11, %c0_12] : memref<8x128xf32, #tpu.memory_space<vmem>>, vector<8x128xf32>
    tpu.vector_store %arg5[%c0_11, %c0_12], %20 {strides = array<i32>} : memref<8x128xf32, #tpu.memory_space<vmem>>, vector<8x128xf32>,
    return
  }
  func.func @transform_0(%arg0: i32) -> (i32, i32) {
    %c0_i32 = arith.constant 0 : i32
    %c0_i32_0 = arith.constant 0 : i32
    return %arg0, %c0_i32 : i32, i32
  }
  func.func @transform_1(%arg0: i32) -> (i32, i32) {
    %c0_i32 = arith.constant 0 : i32
    %c0_i32_0 = arith.constant 0 : i32
    %c0_i32_1 = arith.constant 0 : i32
    return %c0_i32, %c0_i32_0 : i32, i32
  }
  func.func @transform_2(%arg0: i32) -> (i32, i32) {
    %c0_i32 = arith.constant 0 : i32
    %c0_i32_0 = arith.constant 0 : i32
    %c0_i32_1 = arith.constant 0 : i32
    return %c0_i32, %c0_i32_0 : i32, i32
  }
  func.func @transform_3(%arg0: i32) -> (i32, i32) {
    %c0_i32 = arith.constant 0 : i32
    %c0_i32_0 = arith.constant 0 : i32
    %c0_i32_1 = arith.constant 0 : i32
    return %c0_i32, %c0_i32_0 : i32, i32
  }
  func.func @transform_4(%arg0: i32) -> (i32, i32) {
    %c0_i32 = arith.constant 0 : i32
    %c0_i32_0 = arith.constant 0 : i32
    return %arg0, %c0_i32 : i32, i32
  }
}

</mosaic_0001>

<bundles_post_ra>
// kernel: tpu_custom_call.1
= control target key start
LH: loop header
LB: loop body
LE: loop exit
PB: predicated region body
PF: predicated region fallthrough
CT: control target
= control target key end

     0   :  { %9 = vsyncpa [#allocation3], 0  ;;  %s353_s0 = inlined_call_operand.hbm [shape: f32[4,128], index: 0, kind: input, shape index: {}]   ;;  %s354_s1 = inlined_call_operand.hbm [shape: f32[1,128], index: 1, kind: input, shape index: {}]   ;;  %s355_s2 = inlined_call_operand.vmem [shape: f32[1,128], index: 2, kind: input, shape index: {}]   ;;  %s356_s3 = inlined_call_operand.hbm [shape: f32[128,128], index: 3, kind: input, shape index: {}]   ;;  %s357_s4 = inlined_call_operand.hbm [shape: f32[4,128], index: 4, kind: output, shape index: {}]  }
   0x1   :  { %10 = vsyncpa [#allocation6], 0 }
   0x2   :  { %11 = vsyncpa [#allocation4], 0  ;;  %s30_s17 = sshll.u32 %s354_s1, 4  ;;  %s31_s17 = int_to_ptr.hbm [resolvable:$true] %s30_s17 }
   0x3   :  { %15 = vsyncadd [#allocation3], 64  ;;  %s299_s18 = smov [#allocation5]   ;;  %s16_s22 = sshll.u32 %s353_s0, 4  ;;  %s17_s22 = int_to_ptr.hbm [resolvable:$true] %s16_s22 }
   0x4   :  { %s32_s19 = sshll.u32 %s299_s18, 4  ;;  %s300_s23 = smov [#allocation2]   ;;  %s33_s19 = int_to_ptr.vmem [resolvable:$true] %s32_s19 }
   0x5   :  { %35 = dma.hbm_to_vmem [thread:$0]  %s31_s17, 16, %s33_s19, [#allocation6]  }
   0x6   :  { %s18_s24 = sshll.u32 %s300_s23, 4  ;;  %s301_s25 = smov 64   ;;  %s19_s24 = int_to_ptr.vmem [resolvable:$true] %s18_s24 }
   0x7   :  { %s302_s26 = smov 4   ;;  %s42_s28 = sshll.u32 %s356_s3, 4  ;;  %s43_s28 = int_to_ptr.hbm [resolvable:$true] %s42_s28 }
   0x8   :  { %24 = dma.hbm_to_vmem [thread:$0]  %s17_s22, 64, %s19_s24, [#allocation3], %s301_s25, %s301_s25, %s302_s26  }
   0x9   :  { %s303_s29 = smov [#allocation7]   ;;  %s304_s0 = smov 128  }
   0xa   :  { %s44_s30 = sshll.u32 %s303_s29, 4  ;;  %s305_s5 = smov 8   ;;  %s45_s30 = int_to_ptr.vmem [resolvable:$true] %s44_s30 }
   0xb   :  { %50 = dma.hbm_to_vmem [thread:$0]  %s43_s28, 2048, %s45_s30, [#allocation6], %s304_s0, %s304_s0, %s305_s5  }
   0xc   :  { %293 = dma.done.wait [#allocation3], 128  }
   0xd   :  { %294 = vsyncadd [#allocation3], 4294967168 }
   0xe   :  { %295 = dma.done.wait [#allocation6], 2064  }
   0xf   :  { %296 = vsyncadd [#allocation6], 4294965232  ;;  %v79_v0 = vld [vmem:[#allocation7 + $0x78] sm:$0xff]  ;;  %v78_v1 = vld [vmem:[#allocation7 + $0x70] sm:$0xff] }
  0x10   :  { %80 = vmatpush.msra.mxu0 %v79_v0  ;;  %103 = vmatpush.msra.mxu1 %v79_v0  ;;  %v77_v2 = vld [vmem:[#allocation7 + $0x68] sm:$0xff]  ;;  %v76_v3 = vld [vmem:[#allocation7 + $0x60] sm:$0xff]  ;;  %v75_v4 = vld [vmem:[#allocation7 + $0x58] sm:$0xff] }
  0x11   :  { %v74_v5 = vld [vmem:[#allocation7 + $0x50] sm:$0xff]  ;;  %v73_v6 = vld [vmem:[#allocation7 + $0x48] sm:$0xff]  ;;  %v72_v7 = vld [vmem:[#allocation7 + $0x40] sm:$0xff] }
  0x12   :  { %81 = vmatpush.msra.mxu0 %v78_v1  ;;  %104 = vmatpush.msra.mxu1 %v78_v1  ;;  %v71_v8 = vld [vmem:[#allocation7 + $0x38] sm:$0xff]  ;;  %v70_v9 = vld [vmem:[#allocation7 + $0x30] sm:$0xff]  ;;  %v69_v10 = vld [vmem:[#allocation7 + $0x28] sm:$0xff] }
  0x13   :  { %v68_v11 = vld [vmem:[#allocation7 + $0x20] sm:$0xff]  ;;  %v67_v12 = vld [vmem:[#allocation7 + $0x18] sm:$0xff]  ;;  %v66_v13 = vld [vmem:[#allocation7 + $0x10] sm:$0xff] }
  0x14   :  { %82 = vmatpush.msra.mxu0 %v77_v2  ;;  %105 = vmatpush.msra.mxu1 %v77_v2  ;;  %v65_v14 = vld [vmem:[#allocation7 + $0x8] sm:$0xff]  ;;  %v64_v15 = vld [vmem:[#allocation7] sm:$0xff]  ;;  %v63_v16 = vld [vmem:[#allocation2] sm:$0xff] }
  0x15   :  { %v191_v43 = vld [vmem:[#allocation5] ss:$0 sm:$0xff]  ;;  %v192_v46 = vld [vmem:[%s355_s2] ss:$0 sm:$0xff] }
  0x16   :  { %83 = vmatpush.msra.mxu0 %v76_v3  ;;  %106 = vmatpush.msra.mxu1 %v76_v3 }
  0x18   :  { %84 = vmatpush.msra.mxu0 %v75_v4  ;;  %107 = vmatpush.msra.mxu1 %v75_v4 }
  0x1a   :  { %85 = vmatpush.msra.mxu0 %v74_v5  ;;  %108 = vmatpush.msra.mxu1 %v74_v5 }
  0x1c   :  { %86 = vmatpush.msra.mxu0 %v73_v6  ;;  %109 = vmatpush.msra.mxu1 %v73_v6 }
  0x1e   :  { %87 = vmatpush.msra.mxu0 %v72_v7  ;;  %110 = vmatpush.msra.mxu1 %v72_v7 }
  0x20   :  { %88 = vmatpush.msra.mxu0 %v71_v8  ;;  %111 = vmatpush.msra.mxu1 %v71_v8 }
  0x22   :  { %89 = vmatpush.msra.mxu0 %v70_v9  ;;  %112 = vmatpush.msra.mxu1 %v70_v9 }
  0x24   :  { %90 = vmatpush.msra.mxu0 %v69_v10  ;;  %113 = vmatpush.msra.mxu1 %v69_v10 }
  0x26   :  { %91 = vmatpush.msra.mxu0 %v68_v11  ;;  %114 = vmatpush.msra.mxu1 %v68_v11 }
  0x28   :  { %92 = vmatpush.msra.mxu0 %v67_v12  ;;  %115 = vmatpush.msra.mxu1 %v67_v12 }
  0x2a   :  { %93 = vmatpush.msra.mxu0 %v66_v13  ;;  %116 = vmatpush.msra.mxu1 %v66_v13 }
  0x2c   :  { %94 = vmatpush.msra.mxu0 %v65_v14  ;;  %117 = vmatpush.msra.mxu1 %v65_v14 }
  0x2e   :  { %95 = vmatpush.msra.mxu0 %v64_v15  ;;  %118 = vmatpush.msra.mxu1 %v64_v15 }
  0x2f   :  { %96 = vmatmul.f32.vlgmr.msra.gmra.mxu0 %v63_v16 }
  0xac   :  { %v97_v17 = vpop.f32.mrf.mxu0 }
  0xad   :  { %v100_v18 = vmul.f32 0.03125, %v97_v17 }
  0xaf   :  { %v101_v19 = vsub.f32 %v63_v16, %v100_v18 }
  0xb1   :  { %v102_v20 = vmul.f32 %v101_v19, %v101_v19 }
  0xb3   :  { %119 = vmatmul.f32.vlgmr.msra.gmra.mxu1 %v102_v20 }
 0x130   :  { %v120_v21 = vpop.f32.mrf.mxu1 }
 0x131   :  { %v123_v22 = vmul.f32 0.032258064, %v120_v21 }
 0x133   :  { %193 = vrsqrt.f32 %v123_v22  ;;  %vm131_vm0 = vcmp.eq.f32.partialorder %v123_v22, inf  ;;  %v134_v30 = vand.u32 2147483648, %v123_v22  ;;  %vm133_vm1 = vcmp.eq.f32.partialorder %v123_v22, 0.0 }
 0x139   :  { %v194_v23 = vpop.eup %193 }
 0x13a   :  { %v125_v24 = vmul.f32 %v194_v23, %v123_v22 }
 0x13c   :  { %v126_v25 = vmul.f32 %v194_v23, %v125_v24 }
 0x13e   :  { %v127_v26 = vmul.f32 0.5, %v126_v25 }
 0x140   :  { %v128_v27 = vsub.f32 1.5, %v127_v26 }
 0x142   :  { %v129_v28 = vmul.f32 %v194_v23, %v128_v27 }
 0x144   :  { %v130_v29 = vmul.f32 %v129_v28, %v123_v22 }
 0x146   :  { %v132_v31 = vsel %vm131_vm0, %v123_v22, %v130_v29 }
 0x147   :  { %v135_v32 = vsel %vm133_vm1, %v134_v30, %v132_v31 }
 0x148   :  { %v136_v33 = vadd.f32 1e-06, %v135_v32 }
 0x14a   :  { %195 = vrcp.f32 %v136_v33  ;;  %v148_v37 = vand.u32 2147483648, %v136_v33  ;;  %v146_v39 = vand.u32 2147483647, %v136_v33  ;;  %vm142_vm3 = vweird.f32 %v136_v33 }
 0x14c   :  { %v149_v41 = vor.u32 1.1754944e-38, %v148_v37  ;;  %vm147_vm5 = vcmp.eq.f32.partialorder %v146_v39, 8.507059e+37 }
 0x150   :  { %v196_v34 = vpop.eup %195 }
 0x151   :  { %v138_v35 = vmul.f32 %v196_v34, %v136_v33  ;;  %vm143_vm2 = vweird.f32 %v196_v34 }
 0x152   :  { %vm144_vm4 = vmor %vm142_vm3, %vm143_vm2 }
 0x153   :  { %v139_v36 = vsub.f32 1.0, %v138_v35 }
 0x155   :  { %v140_v38 = vmul.f32 %v196_v34, %v139_v36 }
 0x157   :  { %v141_v40 = vadd.f32 %v196_v34, %v140_v38 }
 0x159   :  { %v145_v42 = vsel %vm144_vm4, %v196_v34, %v141_v40 }
 0x15a   :  { %v150_v44 = vsel %vm147_vm5, %v149_v41, %v145_v42 }
 0x15b   :  { %v151_v45 = vmul.f32 %v150_v44, %v101_v19 }
 0x15d   :  { %v156_v47 = vmul.f32 %v191_v43, %v151_v45 }
 0x15f   :  { %v161_v48 = vadd.f32 %v192_v46, %v156_v47 }
 0x161   :  { %162 = vst [vmem:[#allocation8] sm:$0xff] %v161_v48 }
 0x162   :  { %166 = vsyncadd [#allocation4], 64  ;;  %s169_s9 = sshll.u32 %s357_s4, 4  ;;  %s306_s10 = smov [#allocation8]   ;;  %s170_s9 = int_to_ptr.hbm [resolvable:$true] %s169_s9 }
 0x163   :  { %s167_s11 = sshll.u32 %s306_s10, 4  ;;  %s168_s11 = int_to_ptr.vmem [resolvable:$true] %s167_s11 }
 0x164   :  { %175 = dma.vmem_to_hbm [thread:$0]  %s168_s11, 64, %s170_s9, [#allocation4], %s301_s25, %s301_s25, %s302_s26  }
 0x165   :  { %297 = dma.done.wait [#allocation4], 128  }
 0x166   :  { %298 = vsyncadd [#allocation4], 4294967168 }
 0x167   :  { %180 = vsyncpa [#allocation3], 1 }
 0x168   :  { %181 = vsyncpa [#allocation6], 1 }
 0x169   :  { %182 = vsyncpa [#allocation4], 1 }

</bundles_post_ra>
